<compile_context>
chip_gen: v5e
topology: v5e:2x2
jax: 0.10.0
libtpu: 0.0.40
codegen_flags: <defaults>
</compile_context>

<pallas_src>
from dataclasses import dataclass

import jax
import jax.numpy as jnp
from jax.experimental import pallas as pl
from jax.experimental.pallas import tpu as pltpu


def _round_up(x, m):
    return ((x + m - 1) // m) * m


def _pick_tile_n(n, prefer=512):
    """Largest tile width <= `prefer` that is a multiple of 128 and divides n.

    Falls back to the full dimension (always a legal single block)."""
    if n <= prefer:
        return n
    for cand in (512, 384, 256, 128):
        if cand <= prefer and n % cand == 0:
            return cand
    return n


# --------------------------------------------------------------------------
# Kernel 1 (projection branch): fused gather -> Linear -> Tanh -> Linear.
# Grid is over the output dimension N; w2/b2/out are streamed per tile, the
# gather + first matmul + tanh is hoisted into a VMEM scratch computed once.
# --------------------------------------------------------------------------
def _fused_prefix_mlp_kernel(idx_ref, table_ref, w1_ref, b1_ref,
                             w2_ref, b2_ref, o_ref, h_ref):
    @pl.when(pl.program_id(0) == 0)
    def _():
        ids = idx_ref[...]                                       # (M_pad, 1) int32
        n_rows = table_ref.shape[0]
        iota = jax.lax.broadcasted_iota(jnp.int32, (ids.shape[0], n_rows), 1)
        onehot = (ids == iota).astype(jnp.float32)               # (M_pad, P)
        tok = jnp.dot(onehot, table_ref[...],
                      preferred_element_type=jnp.float32)        # gather on MXU
        h = jnp.dot(tok, w1_ref[...], preferred_element_type=jnp.float32)
        h_ref[...] = jnp.tanh(h + b1_ref[...])                   # (M_pad, PH)

    # Per-tile hot loop: single MXU matmul against the streamed w2 tile.
    o = jnp.dot(h_ref[...], w2_ref[...], preferred_element_type=jnp.float32)
    o_ref[...] = (o + b2_ref[...]).astype(o_ref.dtype)


def prefix_projection_forward(flat_idx, table, w1, b1, w2, b2):
    M = flat_idx.shape[0]
    P, H = table.shape
    PH = w1.shape[1]
    N = w2.shape[1]

    M_pad = _round_up(M, 8)
    idx2d = jnp.pad(flat_idx.astype(jnp.int32), (0, M_pad - M)).reshape(M_pad, 1)

    TN = _pick_tile_n(N)
    grid = (N // TN,)

    out = pl.pallas_call(
        _fused_prefix_mlp_kernel,
        out_shape=jax.ShapeDtypeStruct((M_pad, N), jnp.float32),
        grid_spec=pltpu.PrefetchScalarGridSpec(
            num_scalar_prefetch=0,
            grid=grid,
            in_specs=[
                pl.BlockSpec((M_pad, 1), lambda j: (0, 0)),   # indices (DMA'd once)
                pl.BlockSpec((P, H), lambda j: (0, 0)),       # embedding table
                pl.BlockSpec((H, PH), lambda j: (0, 0)),      # w1
                pl.BlockSpec((1, PH), lambda j: (0, 0)),      # b1
                pl.BlockSpec((PH, TN), lambda j: (0, j)),     # w2 streamed over N
                pl.BlockSpec((1, TN), lambda j: (0, j)),      # b2
            ],
            out_specs=pl.BlockSpec((M_pad, TN), lambda j: (0, j)),
            scratch_shapes=[pltpu.VMEM((M_pad, PH), jnp.float32)],
        ),
        # "arbitrary": the N axis carries the h-scratch init (program_id == 0),
        # so it must not be sharded across cores.
        # TODO(synk): per-core h init would allow "parallel" on v7x megacore.
        compiler_params=pltpu.CompilerParams(
            dimension_semantics=("arbitrary",)),
    )(idx2d, table, w1, b1, w2, b2)
    return out[:M]


# --------------------------------------------------------------------------
# Kernel 2 (no-projection branch): whole-batch embedding gather via one-hot
# matmul, streaming the wide table over its output dimension.
# --------------------------------------------------------------------------
def _gather_kernel(idx_ref, table_ref, o_ref):
    ids = idx_ref[...]                                           # (M_pad, 1)
    n_rows = table_ref.shape[0]
    iota = jax.lax.broadcasted_iota(jnp.int32, (ids.shape[0], n_rows), 1)
    onehot = (ids == iota).astype(jnp.float32)                   # (M_pad, P)
    o_ref[...] = jnp.dot(onehot, table_ref[...],
                         preferred_element_type=jnp.float32).astype(o_ref.dtype)


def embedding_lookup(flat_idx, table):
    M = flat_idx.shape[0]
    P, N = table.shape
    M_pad = _round_up(M, 8)
    idx2d = jnp.pad(flat_idx.astype(jnp.int32), (0, M_pad - M)).reshape(M_pad, 1)
    TN = _pick_tile_n(N)

    out = pl.pallas_call(
        _gather_kernel,
        out_shape=jax.ShapeDtypeStruct((M_pad, N), table.dtype),
        grid_spec=pltpu.PrefetchScalarGridSpec(
            num_scalar_prefetch=0,
            grid=(N // TN,),
            in_specs=[
                pl.BlockSpec((M_pad, 1), lambda j: (0, 0)),   # indices
                pl.BlockSpec((P, TN), lambda j: (0, j)),      # table, streamed
            ],
            out_specs=pl.BlockSpec((M_pad, TN), lambda j: (0, j)),
        ),
        compiler_params=pltpu.CompilerParams(
            dimension_semantics=("parallel",)),
    )(idx2d, table)
    return out[:M]


# --------------------------------------------------------------------------
# Module wrapper (parameter setup + reshape glue in plain JAX).
# --------------------------------------------------------------------------
@dataclass
class PrefixConfig:
    prefix_projection: bool
    pre_seq_len: int
    hidden_size: int
    prefix_hidden_size: int
    num_hidden_layers: int


class PrefixEncoderPallas:
    def __init__(self, config: PrefixConfig, key):
        self.config = config
        self.prefix_projection = config.prefix_projection
        out_dim = config.num_hidden_layers * 2 * config.hidden_size
        k = jax.random.split(key, 5)
        if self.prefix_projection:
            self.embedding = 0.02 * jax.random.normal(
                k[0], (config.pre_seq_len, config.hidden_size), jnp.float32)
            s1 = 1.0 / jnp.sqrt(config.hidden_size)
            s2 = 1.0 / jnp.sqrt(config.prefix_hidden_size)
            self.w1 = jax.random.uniform(
                k[1], (config.hidden_size, config.prefix_hidden_size),
                jnp.float32, -s1, s1)
            self.b1 = jax.random.uniform(
                k[2], (1, config.prefix_hidden_size), jnp.float32, -s1, s1)
            self.w2 = jax.random.uniform(
                k[3], (config.prefix_hidden_size, out_dim), jnp.float32, -s2, s2)
            self.b2 = jax.random.uniform(
                k[4], (1, out_dim), jnp.float32, -s2, s2)
        else:
            self.embedding = 0.02 * jax.random.normal(
                k[0], (config.pre_seq_len, out_dim), jnp.float32)

    def __call__(self, prefix):
        B, L = prefix.shape
        flat_idx = prefix.reshape(-1).astype(jnp.int32)              # (B*L,)
        if self.prefix_projection:
            out = prefix_projection_forward(
                flat_idx, self.embedding, self.w1, self.b1, self.w2, self.b2)
        else:
            out = embedding_lookup(flat_idx, self.embedding)
        return out.reshape(B, L, -1)

    # pure-JAX reference for verification
    def reference(self, prefix):
        tok = self.embedding[prefix]
        if self.prefix_projection:
            h = jnp.tanh(tok @ self.w1 + self.b1[0])
            return h @ self.w2 + self.b2[0]
        return tok


if __name__ == "__main__":
    cfg = PrefixConfig(
        prefix_projection=True,
        pre_seq_len=8,
        hidden_size=32,
        prefix_hidden_size=64,
        num_hidden_layers=2,
    )
    root = jax.random.PRNGKey(0)
    k_params, k_prefix, k_params2 = jax.random.split(root, 3)

    batch, prefix_len = 2, 8
    prefix = jax.random.randint(
        k_prefix, (batch, prefix_len), 0, cfg.pre_seq_len, dtype=jnp.int32)

    # --- projection branch (fused gather + MLP kernel) ---
    enc = PrefixEncoderPallas(cfg, k_params)
    out = jax.block_until_ready(enc(prefix))
    assert out.shape == (batch, prefix_len,
                         2 * cfg.num_hidden_layers * cfg.hidden_size), out.shape
    ref = enc.reference(prefix)
    assert jnp.allclose(out, ref, rtol=1e-3, atol=1e-3), "projection branch mismatch"

    # --- no-projection branch (pure gather kernel) ---
    cfg2 = PrefixConfig(False, cfg.pre_seq_len, cfg.hidden_size,
                        cfg.prefix_hidden_size, cfg.num_hidden_layers)
    enc2 = PrefixEncoderPallas(cfg2, k_params2)
    out2 = jax.block_until_ready(enc2(prefix))
    assert out2.shape == (batch, prefix_len,
                          2 * cfg.num_hidden_layers * cfg.hidden_size), out2.shape
    assert jnp.allclose(out2, enc2.reference(prefix), rtol=1e-5, atol=1e-5), \
        "embedding branch mismatch"

    print("KERNEL_OK")
</pallas_src>

<mosaic_0001>
module attributes {stable_mosaic.version = 11 : i64} {
  func.func @_fused_prefix_mlp_kernel(%arg0: i32, %arg1: memref<16x1xi32, #tpu.memory_space<vmem>>, %arg2: memref<8x32xf32, #tpu.memory_space<vmem>>, %arg3: memref<32x64xf32, #tpu.memory_space<vmem>>, %arg4: memref<1x64xf32, #tpu.memory_space<vmem>>, %arg5: memref<64x128xf32, #tpu.memory_space<vmem>>, %arg6: memref<1x128xf32, #tpu.memory_space<vmem>>, %arg7: memref<16x128xf32, #tpu.memory_space<vmem>>, %arg8: memref<16x64xf32, #tpu.memory_space<vmem>>) attributes {dimension_semantics = [#tpu.dimension_semantics<arbitrary>], iteration_bounds = array<i64: 1>, scalar_prefetch = 0 : i64, scratch_operands = 1 : i64, tpu.core_type = #tpu.core_type<tc>, window_params = [{pipeline_mode = #tpu.pipeline_mode<synchronous>, transform_indices = @transform_0, window_bounds = array<i64: 16, 1>}, {pipeline_mode = #tpu.pipeline_mode<synchronous>, transform_indices = @transform_1, window_bounds = array<i64: 8, 32>}, {pipeline_mode = #tpu.pipeline_mode<synchronous>, transform_indices = @transform_2, window_bounds = array<i64: 32, 64>}, {pipeline_mode = #tpu.pipeline_mode<synchronous>, transform_indices = @transform_3, window_bounds = array<i64: 1, 64>}, {transform_indices = @transform_4, window_bounds = array<i64: 64, 128>}, {transform_indices = @transform_5, window_bounds = array<i64: 1, 128>}, {transform_indices = @transform_6, window_bounds = array<i64: 16, 128>}]} {
    %c0_i32 = arith.constant 0 : i32
    %0 = arith.cmpi eq, %arg0, %c0_i32 : i32
    %1 = arith.extui %0 : i1 to i32
    %c0_i32_0 = arith.constant 0 : i32
    %2 = arith.cmpi ne, %1, %c0_i32_0 : i32
    scf.if %2 {
      %c0_8 = arith.constant 0 : index
      %c0_9 = arith.constant 0 : index
      %10 = vector.load %arg1[%c0_8, %c0_9] : memref<16x1xi32, #tpu.memory_space<vmem>>, vector<16x1xi32>
      %11 = tpu.iota {dimensions = array<i32: 1>} : vector<16x8xi32>
      %12 = vector.broadcast %10 : vector<16x1xi32> to vector<16x8xi32>
      %13 = arith.cmpi eq, %12, %11 : vector<16x8xi32>
      %14 = arith.extui %13 : vector<16x8xi1> to vector<16x8xi32>
      %15 = arith.sitofp %14 : vector<16x8xi32> to vector<16x8xf32>
      %c0_10 = arith.constant 0 : index
      %c0_11 = arith.constant 0 : index
      %16 = vector.load %arg2[%c0_10, %c0_11] : memref<8x32xf32, #tpu.memory_space<vmem>>, vector<8x32xf32>
      %cst_12 = arith.constant dense<0.000000e+00> : vector<16x32xf32>
      %17 = tpu.matmul %15, %16, %cst_12 {dimension_numbers = #tpu.dot_dimension_numbers<[1], [0], [0], [1], [0, 0, 1, 1], [], []>} : vector<16x8xf32>, vector<8x32xf32>, vector<16x32xf32> -> vector<16x32xf32>
      %c0_13 = arith.constant 0 : index
      %c0_14 = arith.constant 0 : index
      %18 = vector.load %arg3[%c0_13, %c0_14] : memref<32x64xf32, #tpu.memory_space<vmem>>, vector<32x64xf32>
      %cst_15 = arith.constant dense<0.000000e+00> : vector<16x64xf32>
      %19 = tpu.matmul %17, %18, %cst_15 {dimension_numbers = #tpu.dot_dimension_numbers<[1], [0], [0], [1], [0, 0, 1, 1], [], []>} : vector<16x32xf32>, vector<32x64xf32>, vector<16x64xf32> -> vector<16x64xf32>
      %c0_16 = arith.constant 0 : index
      %c0_17 = arith.constant 0 : index
      %20 = vector.load %arg4[%c0_16, %c0_17] : memref<1x64xf32, #tpu.memory_space<vmem>>, vector<1x64xf32>
      %21 = vector.broadcast %20 : vector<1x64xf32> to vector<16x64xf32>
      %22 = arith.addf %19, %21 : vector<16x64xf32>
      %23 = math.tanh %22 : vector<16x64xf32>
      %c0_18 = arith.constant 0 : index
      %c0_19 = arith.constant 0 : index
      %24 = vector.load %arg8[%c0_18, %c0_19] : memref<16x64xf32, #tpu.memory_space<vmem>>, vector<16x64xf32>
      tpu.vector_store %arg8[%c0_18, %c0_19], %23 {strides = array<i32>} : memref<16x64xf32, #tpu.memory_space<vmem>>, vector<16x64xf32>,
    } else {
    }
    %c0 = arith.constant 0 : index
    %c0_1 = arith.constant 0 : index
    %3 = vector.load %arg8[%c0, %c0_1] : memref<16x64xf32, #tpu.memory_space<vmem>>, vector<16x64xf32>
    %c0_2 = arith.constant 0 : index
    %c0_3 = arith.constant 0 : index
    %4 = vector.load %arg5[%c0_2, %c0_3] : memref<64x128xf32, #tpu.memory_space<vmem>>, vector<64x128xf32>
    %cst = arith.constant dense<0.000000e+00> : vector<16x128xf32>
    %5 = tpu.matmul %3, %4, %cst {dimension_numbers = #tpu.dot_dimension_numbers<[1], [0], [0], [1], [0, 0, 1, 1], [], []>} : vector<16x64xf32>, vector<64x128xf32>, vector<16x128xf32> -> vector<16x128xf32>
    %c0_4 = arith.constant 0 : index
    %c0_5 = arith.constant 0 : index
    %6 = vector.load %arg6[%c0_4, %c0_5] : memref<1x128xf32, #tpu.memory_space<vmem>>, vector<1x128xf32>
    %7 = vector.broadcast %6 : vector<1x128xf32> to vector<16x128xf32>
    %8 = arith.addf %5, %7 : vector<16x128xf32>
    %c0_6 = arith.constant 0 : index
    %c0_7 = arith.constant 0 : index
    %9 = vector.load %arg7[%c0_6, %c0_7] : memref<16x128xf32, #tpu.memory_space<vmem>>, vector<16x128xf32>
    tpu.vector_store %arg7[%c0_6, %c0_7], %8 {strides = array<i32>} : memref<16x128xf32, #tpu.memory_space<vmem>>, vector<16x128xf32>,
    return
  }
  func.func @transform_0(%arg0: i32) -> (i32, i32) {
    %c0_i32 = arith.constant 0 : i32
    %c0_i32_0 = arith.constant 0 : i32
    %c0_i32_1 = arith.constant 0 : i32
    return %c0_i32, %c0_i32_0 : i32, i32
  }
  func.func @transform_1(%arg0: i32) -> (i32, i32) {
    %c0_i32 = arith.constant 0 : i32
    %c0_i32_0 = arith.constant 0 : i32
    %c0_i32_1 = arith.constant 0 : i32
    return %c0_i32, %c0_i32_0 : i32, i32
  }
  func.func @transform_2(%arg0: i32) -> (i32, i32) {
    %c0_i32 = arith.constant 0 : i32
    %c0_i32_0 = arith.constant 0 : i32
    %c0_i32_1 = arith.constant 0 : i32
    return %c0_i32, %c0_i32_0 : i32, i32
  }
  func.func @transform_3(%arg0: i32) -> (i32, i32) {
    %c0_i32 = arith.constant 0 : i32
    %c0_i32_0 = arith.constant 0 : i32
    %c0_i32_1 = arith.constant 0 : i32
    return %c0_i32, %c0_i32_0 : i32, i32
  }
  func.func @transform_4(%arg0: i32) -> (i32, i32) {
    %c0_i32 = arith.constant 0 : i32
    %c0_i32_0 = arith.constant 0 : i32
    return %c0_i32, %arg0 : i32, i32
  }
  func.func @transform_5(%arg0: i32) -> (i32, i32) {
    %c0_i32 = arith.constant 0 : i32
    %c0_i32_0 = arith.constant 0 : i32
    return %c0_i32, %arg0 : i32, i32
  }
  func.func @transform_6(%arg0: i32) -> (i32, i32) {
    %c0_i32 = arith.constant 0 : i32
    %c0_i32_0 = arith.constant 0 : i32
    return %c0_i32, %arg0 : i32, i32
  }
}

</mosaic_0001>

<bundles_post_ra>
// kernel: tpu_custom_call.1
= control target key start
LH: loop header
LB: loop body
LE: loop exit
PB: predicated region body
PF: predicated region fallthrough
CT: control target
= control target key end

     0   :  { %11 = vsyncpa [#allocation4], 0  ;;  %s399_s0 = inlined_call_operand.vmem [shape: s32[16,1], index: 0, kind: input, shape index: {}]   ;;  %s400_s1 = inlined_call_operand.vmem [shape: f32[8,32], index: 1, kind: input, shape index: {}]   ;;  %s401_s2 = inlined_call_operand.hbm [shape: f32[32,64], index: 2, kind: input, shape index: {}]   ;;  %s402_s3 = inlined_call_operand.vmem [shape: f32[1,64], index: 3, kind: input, shape index: {}]   ;;  %s403_s4 = inlined_call_operand.hbm [shape: f32[64,128], index: 4, kind: input, shape index: {}]   ;;  %s404_s5 = inlined_call_operand.vmem [shape: f32[1,128], index: 5, kind: input, shape index: {}]   ;;  %s405_s6 = inlined_call_operand.hbm [shape: f32[16,128], index: 6, kind: output, shape index: {}]  }
   0x1   :  { %12 = vsyncpa [#allocation7], 0 }
   0x2   :  { %13 = vsyncpa [#allocation5], 0  ;;  %s22_s23 = sshll.u32 %s401_s2, 4  ;;  %s324_s24 = smov [#allocation3]   ;;  %s23_s23 = int_to_ptr.hbm [resolvable:$true] %s22_s23 }
   0x3   :  { %s24_s25 = sshll.u32 %s324_s24, 4  ;;  %s37_s28 = sshll.u32 %s403_s4, 4  ;;  %s25_s25 = int_to_ptr.vmem [resolvable:$true] %s24_s25  ;;  %s38_s28 = int_to_ptr.hbm [resolvable:$true] %s37_s28 }
   0x4   :  { %s325_s29 = smov 128   ;;  %s326_s30 = smov 8  }
   0x5   :  { %30 = dma.hbm_to_vmem [thread:$0]  %s23_s23, 512, %s25_s25, [#allocation4], %s325_s29, %s325_s29, %s326_s30  }
   0x6   :  { %s327_s7 = smov [#allocation6]  }
   0x7   :  { %s39_s8 = sshll.u32 %s327_s7, 4  ;;  %s40_s8 = int_to_ptr.vmem [resolvable:$true] %s39_s8 }
   0x8   :  { %45 = dma.hbm_to_vmem [thread:$0]  %s38_s28, 1024, %s40_s8, [#allocation7], %s325_s29, %s325_s29, %s326_s30  }
   0x9   :  { %318 = dma.done.wait [#allocation4], 512  }
   0xa   :  { %319 = vsyncadd [#allocation4], 4294966784 }
   0xb   :  { %320 = dma.done.wait [#allocation7], 1024  }
   0xc   :  { %321 = vsyncadd [#allocation7], 4294966272  ;;  %v328_v0 = vmov 0   ;;  %v60_v1 = vld [vmem:[%s399_s0] sm:$0xff]  ;;  %v61_v2 = vld [vmem:[%s399_s0 + $0x8] sm:$0xff]  ;;  %v62_v7 = vlaneseq  ;;  %vm77_vm0 = vcmask 64512  }
   0xd   :  { %239 = vset.pattern.permute.xlu0 %v328_v0  ;;  %v76_v3 = vld [vmem:[%s400_s1] sm:$0xff]  ;;  %v110_v4 = vld [vmem:[#allocation3 + $0x18] sm:$0xff]  ;;  %v108_v6 = vld [vmem:[#allocation3 + $0x8] sm:$0xff]  ;;  %v329_v10 = vmov 0.0   ;;  %vm115_vm3 = vcmask 261120   ;;  %vm147_vm4 = vcmask 523264  }
   0xe   :  { %65 = vperm.xlu0 %239, %v60_v1   ;;  %99 = vmatpush.msra.mxu0 %v76_v3  ;;  %v109_v5 = vld [vmem:[#allocation3 + $0x10] sm:$0xff]  ;;  %v63_v8 = vand.u32 127, %v62_v7  ;;  %v107_v14 = vld [vmem:[#allocation3] sm:$0xff]  ;;  %v159_v17 = vld [vmem:[#allocation6 + $0x38] sm:$0xff]  ;;  %s202_s18 = sshll.u32 %s405_s6, 4  ;;  %s203_s18 = int_to_ptr.hbm [resolvable:$true] %s202_s18 }
   0xf   :  { %134 = vmatpush.msra.mxu1 %v110_v4  ;;  %179 = vmatpush.msra.mxu2 %v159_v17  ;;  %v158_v18 = vld [vmem:[#allocation6 + $0x30] sm:$0xff]  ;;  %v157_v19 = vld [vmem:[#allocation6 + $0x28] sm:$0xff]  ;;  %v156_v20 = vld [vmem:[#allocation6 + $0x20] sm:$0xff] }
  0x10   :  { %224 = vmatpush.msra.mxu3 %v159_v17  ;;  %v155_v21 = vld [vmem:[#allocation6 + $0x18] sm:$0xff]  ;;  %v154_v22 = vld [vmem:[#allocation6 + $0x10] sm:$0xff]  ;;  %v153_v23 = vld [vmem:[#allocation6 + $0x8] sm:$0xff] }
  0x11   :  { %135 = vmatpush.msra.mxu1 %v109_v5  ;;  %180 = vmatpush.msra.mxu2 %v158_v18  ;;  %v152_v24 = vld [vmem:[#allocation6] sm:$0xff]  ;;  %v240_v25 = vld [vmem:[%s402_s3] ss:$0 sm:$0xff]  ;;  %s330_s3 = smov [#allocation8]  }
  0x12   :  { %225 = vmatpush.msra.mxu3 %v158_v18  ;;  %v241_v34 = vld [vmem:[%s404_s5] ss:$0 sm:$0xff]  ;;  %s200_s15 = sshll.u32 %s330_s3, 4  ;;  %s201_s15 = int_to_ptr.vmem [resolvable:$true] %s200_s15 }
  0x13   :  { %136 = vmatpush.msra.mxu1 %v108_v6  ;;  %181 = vmatpush.msra.mxu2 %v157_v19 }
  0x14   :  { %226 = vmatpush.msra.mxu3 %v157_v19 }
  0x15   :  { %137 = vmatpush.msra.mxu1 %v107_v14  ;;  %182 = vmatpush.msra.mxu2 %v156_v20 }
  0x16   :  { %68 = vperm.xlu0 %239, %v61_v2   ;;  %227 = vmatpush.msra.mxu3 %v156_v20 }
  0x17   :  { %183 = vmatpush.msra.mxu2 %v155_v21 }
  0x18   :  { %228 = vmatpush.msra.mxu3 %v155_v21 }
  0x19   :  { %184 = vmatpush.msra.mxu2 %v154_v22 }
  0x1a   :  { %229 = vmatpush.msra.mxu3 %v154_v22 }
  0x1b   :  { %185 = vmatpush.msra.mxu2 %v153_v23 }
  0x1c   :  { %230 = vmatpush.msra.mxu3 %v153_v23 }
  0x1d   :  { %186 = vmatpush.msra.mxu2 %v152_v24 }
  0x1e   :  { %231 = vmatpush.msra.mxu3 %v152_v24 }
  0x80   :  { %v66_v9 = vpop.permute.xlu0 %65 }
  0x81   :  { %vm70_vm1 = vcmp.eq.s32.totalorder %v66_v9, %v63_v8 }
  0x82   :  { %v216_v11 = vsel %vm70_vm1, 1.0, %v329_v10 }
  0x83   :  { %218 = vmatmul.msk.f32.vlgmr.msra.gmra.mxu0 %vm77_vm0, %v216_v11 }
  0x88   :  { %v69_v12 = vpop.permute.xlu0 %68 }
  0x89   :  { %vm71_vm2 = vcmp.eq.s32.totalorder %v69_v12, %v63_v8 }
  0x8a   :  { %v217_v13 = vsel %vm71_vm2, 1.0, %v329_v10 }
  0x8b   :  { %219 = vmatmul.msk.f32.gmra.mxu0 %vm77_vm0, %v217_v13 }
 0x100   :  { %v101_v15 = vpop.f32.mrf.mxu0 }
 0x101   :  { %220 = vmatmul.msk.f32.vlgmr.msra.gmra.mxu1 %vm115_vm3, %v101_v15 }
 0x108   :  { %v104_v16 = vpop.f32.mrf.mxu0 }
 0x109   :  { %221 = vmatmul.msk.f32.gmra.mxu1 %vm115_vm3, %v104_v16 }
 0x17e   :  { %v139_v26 = vpop.f32.mrf.mxu1 }
 0x17f   :  { %v140_v27 = vadd.f32 %v240_v25, %v139_v26 }
 0x181   :  { %242 = vtanh.f32 %v140_v27 }
 0x186   :  { %v142_v28 = vpop.f32.mrf.mxu1 }
 0x187   :  { %v243_v29 = vpop.eup %242  ;;  %v143_v30 = vadd.f32 %v240_v25, %v142_v28 }
 0x188   :  { %148 = vst.msk [vmem:[#allocation2] sm:$0xff] %vm147_vm4, %v243_v29 }
 0x189   :  { %244 = vtanh.f32 %v143_v30 }
 0x18f   :  { %v245_v31 = vpop.eup %244  ;;  %v150_v32 = vld [vmem:[#allocation2] sm:$0xff] }
 0x190   :  { %149 = vst.msk [vmem:[#allocation2 + $0x8] sm:$0xff] %vm147_vm4, %v245_v31  ;;  %222 = vmatmul.msk.f32.vlgmr.msra.gmra.mxu2 %vm147_vm4, %v150_v32 }
 0x197   :  { %v151_v33 = vld [vmem:[#allocation2 + $0x8] sm:$0xff] }
 0x198   :  { %223 = vmatmul.msk.f32.vlgmr.msra.gmra.mxu3 %vm147_vm4, %v151_v33 }
 0x213   :  { %v188_v35 = vpop.f32.mrf.mxu2 }
 0x214   :  { %v189_v36 = vadd.f32 %v241_v34, %v188_v35 }
 0x216   :  { %194 = vst [vmem:[#allocation8] sm:$0xff] %v189_v36 }
 0x21b   :  { %v191_v37 = vpop.f32.mrf.mxu3 }
 0x21c   :  { %v192_v38 = vadd.f32 %v241_v34, %v191_v37 }
 0x21e   :  { %195 = vst [vmem:[#allocation8 + $0x8] sm:$0xff] %v192_v38 }
 0x21f   :  { %208 = dma.vmem_to_hbm [thread:$0]  %s201_s15, 256, %s203_s18, [#allocation5], %s325_s29, %s325_s29, %s326_s30  }
 0x220   :  { %322 = dma.done.wait [#allocation5], 256  }
 0x221   :  { %323 = vsyncadd [#allocation5], 4294967040 }
 0x222   :  { %213 = vsyncpa [#allocation4], 1 }
 0x223   :  { %214 = vsyncpa [#allocation7], 1 }
 0x224   :  { %215 = vsyncpa [#allocation5], 1 }

</bundles_post_ra>
